<compile_context>
chip_gen: v7x
topology: tpu7x:2x2x1
jax: 0.10.0
libtpu: 0.0.40
codegen_flags: <defaults>
</compile_context>

<pallas_src>
import functools

import jax
import jax.numpy as jnp
from jax import lax
from jax.experimental import pallas as pl
from jax.experimental.pallas import tpu as pltpu

PAIR_EPS = 1e-6  # torch pairwise_distance / TripletMarginLoss default eps


def _combined_loss_kernel(
    perm_ref,       # (TB, 1)  int32 : perm[anchor] for the neural rows of this block
    n_ref,          # (TB, Dp) f32   : neural rows (anchors / logits^T rows), resident per qi
    t_ref,          # (TB, Dp) f32   : text rows (logits^T columns), streamed over kj
    diag_ref,       # out (TB, 1) f32: logits[i, i]
    lse_row_ref,    # out (TB, 1) f32: logsumexp over text of logits^T rows
    hinge_ref,      # out (TB, 1) f32: per-anchor triplet hinge
    col_stats_ref,  # out (8, TB) f32: rows 0/1 = per-text-column partial max / sumexp
    n_s_sc,         # scratch (TB, Dp) f32 : normalized neural rows (set at kj == 0)
    row_m_sc, row_l_sc, sel_an_sc, diag_sc, ap_sc,  # scratch (TB, 1) f32
    *, inv_temperature, margin, d_true, block_b, matmul_dtype):
    qi = pl.program_id(0)                  # neural (anchor) row block — "parallel"
    kj = pl.program_id(1)                  # text column block — reduction axis
    temperature = 1.0 / inv_temperature
    eps = PAIR_EPS

    # --- normalize the streamed text block; fold 1/temperature into its scale ----
    t = t_ref[...].astype(jnp.float32)
    t_ss = jnp.sum(t * t, axis=-1, keepdims=True)
    t_s = t * (inv_temperature * lax.rsqrt(jnp.maximum(t_ss, 1e-24)))     # (TB, Dp)
    ts_sum = jnp.sum(t_s, axis=-1, keepdims=True)                         # (TB, 1) = s_t / temp

    # --- once per row block: normalize resident neural rows, reset accumulators --
    @pl.when(kj == 0)
    def _():
        n = n_ref[...].astype(jnp.float32)
        n_ss = jnp.sum(n * n, axis=-1, keepdims=True)
        n_s_sc[...] = n * lax.rsqrt(jnp.maximum(n_ss, 1e-24))
        row_m_sc[...] = jnp.full(row_m_sc.shape, -jnp.inf, dtype=jnp.float32)
        row_l_sc[...] = jnp.zeros(row_l_sc.shape, dtype=jnp.float32)
        sel_an_sc[...] = jnp.zeros(sel_an_sc.shape, dtype=jnp.float32)

    n_s = n_s_sc[...]                                                     # (TB, Dp), unit rows

    # --- single MXU matmul: S[r, c] = n_n[r] . t_n[c] / temperature  -------------
    dims = (((1,), (1,)), ((), ()))        # contract feature dim of both (no transpose)
    s = lax.dot_general(n_s.astype(matmul_dtype), t_s.astype(matmul_dtype),
                        dims, preferred_element_type=jnp.float32)         # (TB, TB)

    # --- online LSE over text columns (one softmax direction) --------------------
    m_prev = row_m_sc[...]
    m_new = jnp.maximum(m_prev, jnp.max(s, axis=-1, keepdims=True))
    row_l_sc[...] = (row_l_sc[...] * jnp.exp(m_prev - m_new)
                     + jnp.sum(jnp.exp(s - m_new), axis=-1, keepdims=True))
    row_m_sc[...] = m_new

    # --- per-text-column partial stats (other direction); merged in the wrapper --
    cm = jnp.max(s, axis=0, keepdims=True)                                # (1, TB)
    cl = jnp.sum(jnp.exp(s - cm), axis=0, keepdims=True)                  # (1, TB)
    col_stats_ref[0:1, :] = cm
    col_stats_ref[1:2, :] = cl
    col_stats_ref[2:8, :] = jnp.zeros((6, block_b), dtype=jnp.float32)

    # --- triplet negative term: select S[r, perm[r]] (+ eps * sum(t_n[perm[r]])) -
    col_ids = kj * block_b + lax.broadcasted_iota(jnp.int32, (block_b, block_b), 1)
    mask = (perm_ref[...] == col_ids).astype(jnp.float32)                 # one-hot-per-row
    sel_cos = jnp.sum(mask * s, axis=-1, keepdims=True) * temperature     # cos(n[r], t[perm[r]])
    sel_eps = lax.dot_general(mask, ts_sum, (((1,), (0,)), ((), ())),
                              preferred_element_type=jnp.float32) * (eps * temperature)
    sel_an_sc[...] = sel_an_sc[...] + sel_cos + sel_eps

    # --- diagonal block: logits[i, i] and the positive-pair term, in f32 ---------
    @pl.when(kj == qi)
    def _():
        d_logit = jnp.sum(n_s * t_s, axis=-1, keepdims=True)              # (TB, 1)
        diag_sc[...] = d_logit
        ap_sc[...] = d_logit * temperature + (eps * temperature) * ts_sum # cos_ap + eps*sum(t_n[i])

    # --- finalize this row block on the last text block --------------------------
    @pl.when(kj == pl.num_programs(1) - 1)
    def _():
        lse_row_ref[...] = row_m_sc[...] + jnp.log(row_l_sc[...])
        diag_ref[...] = diag_sc[...]
        # ||a - p + eps||^2 with unit-norm rows; padded feature lanes contribute 0,
        # so the eps correction stays exact under feature-dim padding.
        # TODO(synk): assumes non-degenerate (non-zero) embedding rows, as F.normalize.
        s_n = jnp.sum(n_s, axis=-1, keepdims=True)
        base = 2.0 + 2.0 * eps * s_n + float(d_true) * eps * eps
        d_ap = jnp.sqrt(jnp.maximum(base - 2.0 * ap_sc[...], 0.0))
        d_an = jnp.sqrt(jnp.maximum(base - 2.0 * sel_an_sc[...], 0.0))
        hinge_ref[...] = jnp.maximum(d_ap - d_an + margin, 0.0)


def combined_clip_triplet_loss(neural_embeddings, text_embeddings, perm,
                               temperature=0.07, margin=1.0, alpha=0.5,
                               block_b=256, matmul_dtype=jnp.bfloat16):
    """JAX/Pallas equivalent of CombinedCLIPTripletLoss.forward.

    neural_embeddings, text_embeddings: (B, D);  perm: (B,) int permutation
    (deterministic stand-in for torch.randperm).  Returns a scalar f32 loss.
    """
    B, D = neural_embeddings.shape
    assert text_embeddings.shape == (B, D)

    # Pad the feature dim to a lane-dense multiple of 128 (zeros don't change
    # norms / dot products; the eps term is handled algebraically in-kernel).
    D_pad = ((D + 127) // 128) * 128
    if D_pad != D:
        pad = ((0, 0), (0, D_pad - D))
        neural_embeddings = jnp.pad(neural_embeddings, pad)
        text_embeddings = jnp.pad(text_embeddings, pad)

    # Batch tile: prefer the 256-wide MXU tile (v6e/v7x), fall back to 128 (v5e
    # or smaller batches), else a single whole-batch block.
    if B % block_b == 0:
        tb = block_b
    elif B % 128 == 0:
        tb = 128
    else:
        tb = B  # TODO(synk): pad + mask the batch for large batches not divisible by 128.
    nb = B // tb

    perm2d = perm.astype(jnp.int32).reshape(B, 1)

    kernel = functools.partial(
        _combined_loss_kernel,
        inv_temperature=float(1.0 / temperature),
        margin=float(margin),
        d_true=int(D),
        block_b=tb,
        matmul_dtype=matmul_dtype)

    out_shapes = (
        jax.ShapeDtypeStruct((B, 1), jnp.float32),       # diag of logits
        jax.ShapeDtypeStruct((B, 1), jnp.float32),       # per-row LSE (one direction)
        jax.ShapeDtypeStruct((B, 1), jnp.float32),       # per-anchor triplet hinge
        jax.ShapeDtypeStruct((nb * 8, B), jnp.float32),  # per-(row-block) column LSE partials
    )
    in_specs = [
        pl.BlockSpec((tb, 1), lambda qi, kj: (qi, 0)),       # perm
        pl.BlockSpec((tb, D_pad), lambda qi, kj: (qi, 0)),   # neural rows (resident per qi)
        pl.BlockSpec((tb, D_pad), lambda qi, kj: (kj, 0)),   # text rows (streamed)
    ]
    out_specs = (
        pl.BlockSpec((tb, 1), lambda qi, kj: (qi, 0)),
        pl.BlockSpec((tb, 1), lambda qi, kj: (qi, 0)),
        pl.BlockSpec((tb, 1), lambda qi, kj: (qi, 0)),
        pl.BlockSpec((8, tb), lambda qi, kj: (qi, kj)),
    )
    scratch_shapes = [
        pltpu.VMEM((tb, D_pad), jnp.float32),   # normalized neural rows
        pltpu.VMEM((tb, 1), jnp.float32),       # running row max
        pltpu.VMEM((tb, 1), jnp.float32),       # running row sum-exp
        pltpu.VMEM((tb, 1), jnp.float32),       # selected negative-pair term
        pltpu.VMEM((tb, 1), jnp.float32),       # diag logits
        pltpu.VMEM((tb, 1), jnp.float32),       # positive-pair term
    ]

    # Explicit scoped-VMEM budget (double-buffered tiles + scratch + temporaries),
    # capped at v7x's 64 MiB physical VMEM.
    est = 4 * (2 * 2 * tb * D_pad + tb * D_pad + 6 * tb * tb + 64 * tb)
    vmem_limit = int(min(max(2 * est, 8 * 2**20), 64 * 2**20))

    diag, lse_row, hinge, col_stats = pl.pallas_call(
        kernel,
        out_shape=out_shapes,
        grid_spec=pltpu.PrefetchScalarGridSpec(
            num_scalar_prefetch=0,
            grid=(nb, nb),
            in_specs=in_specs,
            out_specs=out_specs,
            scratch_shapes=scratch_shapes),
        compiler_params=pltpu.CompilerParams(
            dimension_semantics=("parallel", "arbitrary"),
            vmem_limit_bytes=vmem_limit),
    )(perm2d, neural_embeddings, text_embeddings)

    # --- tiny O(B) finalization in plain XLA --------------------------------
    diag = diag[:, 0]
    lse_a = lse_row[:, 0]
    hinge = hinge[:, 0]
    cs = col_stats.reshape(nb, 8, B)
    col_m, col_l = cs[:, 0, :], cs[:, 1, :]
    lse_b = jax.nn.logsumexp(col_m + jnp.log(col_l), axis=0)   # merge across row blocks

    clip_loss = 0.5 * (jnp.mean(lse_a - diag) + jnp.mean(lse_b - diag))
    triplet = jnp.mean(hinge)
    return alpha * clip_loss + (1.0 - alpha) * triplet


if __name__ == "__main__":
    key = jax.random.PRNGKey(0)
    k_n, k_t, k_p = jax.random.split(key, 3)

    B, D = 8, 32
    neural = jax.random.normal(k_n, (B, D), dtype=jnp.float32)
    text = jax.random.normal(k_t, (B, D), dtype=jnp.float32)
    perm = jax.random.permutation(k_p, B)   # deterministic stand-in for torch.randperm

    # pure-JAX / torch-semantics reference
    def ref(n, t, perm, temperature=0.07, margin=1.0, alpha=0.5):
        nn_ = n / jnp.maximum(jnp.linalg.norm(n, axis=-1, keepdims=True), 1e-12)
        tn_ = t / jnp.maximum(jnp.linalg.norm(t, axis=-1, keepdims=True), 1e-12)
        logits = tn_ @ nn_.T / temperature
        tgt = jnp.arange(logits.shape[0])
        ce = lambda lg: jnp.mean(jax.nn.logsumexp(lg, axis=-1) - lg[tgt, tgt])
        clip = (ce(logits) + ce(logits.T)) / 2.0
        neg = tn_[perm]
        d_ap = jnp.sqrt(jnp.sum((nn_ - tn_ + 1e-6) ** 2, -1))
        d_an = jnp.sqrt(jnp.sum((nn_ - neg + 1e-6) ** 2, -1))
        trip = jnp.mean(jnp.maximum(d_ap - d_an + margin, 0.0))
        return alpha * clip + (1 - alpha) * trip

    ref_val = ref(neural, text, perm)

    # default fast path: bf16 MXU operands (tolerance sized for bf16 logit error)
    loss_bf16 = combined_clip_triplet_loss(neural, text, perm,
                                           temperature=0.07, margin=1.0, alpha=0.5)
    jax.block_until_ready(loss_bf16)
    assert jnp.allclose(loss_bf16, ref_val, rtol=3e-2, atol=3e-2), (loss_bf16, ref_val)

    # exact-parity path: f32 MXU operands
    loss_f32 = combined_clip_triplet_loss(neural, text, perm,
                                          temperature=0.07, margin=1.0, alpha=0.5,
                                          matmul_dtype=jnp.float32)
    jax.block_until_ready(loss_f32)
    assert jnp.allclose(loss_f32, ref_val, rtol=1e-4, atol=1e-4), (loss_f32, ref_val)

    print("KERNEL_OK")
</pallas_src>

<mosaic_0001>
module attributes {stable_mosaic.version = 11 : i64} {
  func.func @_combined_loss_kernel(%arg0: i32, %arg1: i32, %arg2: memref<8x1xi32, #tpu.memory_space<vmem>>, %arg3: memref<8x128xf32, #tpu.memory_space<vmem>>, %arg4: memref<8x128xf32, #tpu.memory_space<vmem>>, %arg5: memref<8x1xf32, #tpu.memory_space<vmem>>, %arg6: memref<8x1xf32, #tpu.memory_space<vmem>>, %arg7: memref<8x1xf32, #tpu.memory_space<vmem>>, %arg8: memref<8x8xf32, #tpu.memory_space<vmem>>, %arg9: memref<8x128xf32, #tpu.memory_space<vmem>>, %arg10: memref<8x1xf32, #tpu.memory_space<vmem>>, %arg11: memref<8x1xf32, #tpu.memory_space<vmem>>, %arg12: memref<8x1xf32, #tpu.memory_space<vmem>>, %arg13: memref<8x1xf32, #tpu.memory_space<vmem>>, %arg14: memref<8x1xf32, #tpu.memory_space<vmem>>) attributes {dimension_semantics = [#tpu.dimension_semantics<parallel>, #tpu.dimension_semantics<arbitrary>], iteration_bounds = array<i64: 1, 1>, scalar_prefetch = 0 : i64, scratch_operands = 6 : i64, tpu.core_type = #tpu.core_type<tc>, window_params = [{transform_indices = @transform_0, window_bounds = array<i64: 8, 1>}, {transform_indices = @transform_1, window_bounds = array<i64: 8, 128>}, {transform_indices = @transform_2, window_bounds = array<i64: 8, 128>}, {transform_indices = @transform_3, window_bounds = array<i64: 8, 1>}, {transform_indices = @transform_4, window_bounds = array<i64: 8, 1>}, {transform_indices = @transform_5, window_bounds = array<i64: 8, 1>}, {transform_indices = @transform_6, window_bounds = array<i64: 8, 8>}]} {
    %c0 = arith.constant 0 : index
    %c0_0 = arith.constant 0 : index
    %0 = vector.load %arg4[%c0, %c0_0] : memref<8x128xf32, #tpu.memory_space<vmem>>, vector<8x128xf32>
    %1 = arith.mulf %0, %0 : vector<8x128xf32>
    %cst = arith.constant dense<0.000000e+00> : vector<8xf32>
    %2 = vector.multi_reduction <add>, %1, %cst [1] : vector<8x128xf32> to vector<8xf32>
    %3 = vector.shape_cast %2 : vector<8xf32> to vector<8x1xf32>
    %cst_1 = arith.constant 1.000000e-24 : f32
    %4 = vector.broadcast %cst_1 : f32 to vector<8x1xf32>
    %5 = arith.maximumf %3, %4 : vector<8x1xf32>
    %6 = math.rsqrt %5 : vector<8x1xf32>
    %cst_2 = arith.constant 14.2857141 : f32
    %7 = vector.broadcast %cst_2 : f32 to vector<8x1xf32>
    %8 = arith.mulf %7, %6 : vector<8x1xf32>
    %9 = vector.broadcast %8 : vector<8x1xf32> to vector<8x128xf32>
    %10 = arith.mulf %0, %9 : vector<8x128xf32>
    %cst_3 = arith.constant dense<0.000000e+00> : vector<8xf32>
    %11 = vector.multi_reduction <add>, %10, %cst_3 [1] : vector<8x128xf32> to vector<8xf32>
    %12 = vector.shape_cast %11 : vector<8xf32> to vector<8x1xf32>
    %c0_i32 = arith.constant 0 : i32
    %13 = arith.cmpi eq, %arg1, %c0_i32 : i32
    %14 = arith.extui %13 : i1 to i32
    %c0_i32_4 = arith.constant 0 : i32
    %15 = arith.cmpi ne, %14, %c0_i32_4 : i32
    scf.if %15 {
      %c0_38 = arith.constant 0 : index
      %c0_39 = arith.constant 0 : index
      %74 = vector.load %arg3[%c0_38, %c0_39] : memref<8x128xf32, #tpu.memory_space<vmem>>, vector<8x128xf32>
      %75 = arith.mulf %74, %74 : vector<8x128xf32>
      %cst_40 = arith.constant dense<0.000000e+00> : vector<8xf32>
      %76 = vector.multi_reduction <add>, %75, %cst_40 [1] : vector<8x128xf32> to vector<8xf32>
      %77 = vector.shape_cast %76 : vector<8xf32> to vector<8x1xf32>
      %cst_41 = arith.constant 1.000000e-24 : f32
      %78 = vector.broadcast %cst_41 : f32 to vector<8x1xf32>
      %79 = arith.maximumf %77, %78 : vector<8x1xf32>
      %80 = math.rsqrt %79 : vector<8x1xf32>
      %81 = vector.broadcast %80 : vector<8x1xf32> to vector<8x128xf32>
      %82 = arith.mulf %74, %81 : vector<8x128xf32>
      %c0_42 = arith.constant 0 : index
      %c0_43 = arith.constant 0 : index
      %83 = vector.load %arg9[%c0_42, %c0_43] : memref<8x128xf32, #tpu.memory_space<vmem>>, vector<8x128xf32>
      tpu.vector_store %arg9[%c0_42, %c0_43], %82 {strides = array<i32>} : memref<8x128xf32, #tpu.memory_space<vmem>>, vector<8x128xf32>,
      %cst_44 = arith.constant 0xFF800000 : f32
      %84 = vector.broadcast %cst_44 : f32 to vector<8x1xf32>
      %c0_45 = arith.constant 0 : index
      %c0_46 = arith.constant 0 : index
      %85 = vector.load %arg10[%c0_45, %c0_46] : memref<8x1xf32, #tpu.memory_space<vmem>>, vector<8x1xf32>
      tpu.vector_store %arg10[%c0_45, %c0_46], %84 {strides = array<i32>} : memref<8x1xf32, #tpu.memory_space<vmem>>, vector<8x1xf32>,
      %cst_47 = arith.constant 0.000000e+00 : f32
      %86 = vector.broadcast %cst_47 : f32 to vector<8x1xf32>
      %c0_48 = arith.constant 0 : index
      %c0_49 = arith.constant 0 : index
      %87 = vector.load %arg11[%c0_48, %c0_49] : memref<8x1xf32, #tpu.memory_space<vmem>>, vector<8x1xf32>
      tpu.vector_store %arg11[%c0_48, %c0_49], %86 {strides = array<i32>} : memref<8x1xf32, #tpu.memory_space<vmem>>, vector<8x1xf32>,
      %cst_50 = arith.constant 0.000000e+00 : f32
      %88 = vector.broadcast %cst_50 : f32 to vector<8x1xf32>
      %c0_51 = arith.constant 0 : index
      %c0_52 = arith.constant 0 : index
      %89 = vector.load %arg12[%c0_51, %c0_52] : memref<8x1xf32, #tpu.memory_space<vmem>>, vector<8x1xf32>
      tpu.vector_store %arg12[%c0_51, %c0_52], %88 {strides = array<i32>} : memref<8x1xf32, #tpu.memory_space<vmem>>, vector<8x1xf32>,
    } else {
    }
    %c0_5 = arith.constant 0 : index
    %c0_6 = arith.constant 0 : index
    %16 = vector.load %arg9[%c0_5, %c0_6] : memref<8x128xf32, #tpu.memory_space<vmem>>, vector<8x128xf32>
    %17 = arith.truncf %16 : vector<8x128xf32> to vector<8x128xbf16>
    %18 = arith.truncf %10 : vector<8x128xf32> to vector<8x128xbf16>
    %cst_7 = arith.constant dense<0.000000e+00> : vector<8x8xf32>
    %19 = tpu.matmul %17, %18, %cst_7 {dimension_numbers = #tpu.dot_dimension_numbers<[1], [1], [0], [0], [0, 0, 1, 0], [], []>} : vector<8x128xbf16>, vector<8x128xbf16>, vector<8x8xf32> -> vector<8x8xf32>
    %c0_8 = arith.constant 0 : index
    %c0_9 = arith.constant 0 : index
    %20 = vector.load %arg10[%c0_8, %c0_9] : memref<8x1xf32, #tpu.memory_space<vmem>>, vector<8x1xf32>
    %cst_10 = arith.constant dense<0xFF800000> : vector<8xf32>
    %21 = vector.multi_reduction <maximumf>, %19, %cst_10 [1] : vector<8x8xf32> to vector<8xf32>
    %22 = vector.shape_cast %21 : vector<8xf32> to vector<8x1xf32>
    %23 = arith.maximumf %20, %22 : vector<8x1xf32>
    %c0_11 = arith.constant 0 : index
    %c0_12 = arith.constant 0 : index
    %24 = vector.load %arg11[%c0_11, %c0_12] : memref<8x1xf32, #tpu.memory_space<vmem>>, vector<8x1xf32>
    %25 = arith.subf %20, %23 : vector<8x1xf32>
    %26 = math.exp %25 : vector<8x1xf32>
    %27 = arith.mulf %24, %26 : vector<8x1xf32>
    %28 = vector.broadcast %23 : vector<8x1xf32> to vector<8x8xf32>
    %29 = arith.subf %19, %28 : vector<8x8xf32>
    %30 = math.exp %29 : vector<8x8xf32>
    %cst_13 = arith.constant dense<0.000000e+00> : vector<8xf32>
    %31 = vector.multi_reduction <add>, %30, %cst_13 [1] : vector<8x8xf32> to vector<8xf32>
    %32 = vector.shape_cast %31 : vector<8xf32> to vector<8x1xf32>
    %33 = arith.addf %27, %32 : vector<8x1xf32>
    %c0_14 = arith.constant 0 : index
    %c0_15 = arith.constant 0 : index
    %34 = vector.load %arg11[%c0_14, %c0_15] : memref<8x1xf32, #tpu.memory_space<vmem>>, vector<8x1xf32>
    tpu.vector_store %arg11[%c0_14, %c0_15], %33 {strides = array<i32>} : memref<8x1xf32, #tpu.memory_space<vmem>>, vector<8x1xf32>,
    %c0_16 = arith.constant 0 : index
    %c0_17 = arith.constant 0 : index
    %35 = vector.load %arg10[%c0_16, %c0_17] : memref<8x1xf32, #tpu.memory_space<vmem>>, vector<8x1xf32>
    tpu.vector_store %arg10[%c0_16, %c0_17], %23 {strides = array<i32>} : memref<8x1xf32, #tpu.memory_space<vmem>>, vector<8x1xf32>,
    %cst_18 = arith.constant dense<0xFF800000> : vector<8xf32>
    %36 = vector.multi_reduction <maximumf>, %19, %cst_18 [0] : vector<8x8xf32> to vector<8xf32>
    %37 = vector.shape_cast %36 : vector<8xf32> to vector<1x8xf32>
    %38 = vector.broadcast %37 : vector<1x8xf32> to vector<8x8xf32>
    %39 = arith.subf %19, %38 : vector<8x8xf32>
    %40 = math.exp %39 : vector<8x8xf32>
    %cst_19 = arith.constant dense<0.000000e+00> : vector<8xf32>
    %41 = vector.multi_reduction <add>, %40, %cst_19 [0] : vector<8x8xf32> to vector<8xf32>
    %42 = vector.shape_cast %41 : vector<8xf32> to vector<1x8xf32>
    %c0_20 = arith.constant 0 : index
    %c0_21 = arith.constant 0 : index
    %43 = vector.load %arg8[%c0_20, %c0_21] : memref<8x8xf32, #tpu.memory_space<vmem>>, vector<1x8xf32>
    tpu.vector_store %arg8[%c0_20, %c0_21], %37 {strides = array<i32>} : memref<8x8xf32, #tpu.memory_space<vmem>>, vector<1x8xf32>,
    %c1 = arith.constant 1 : index
    %c0_22 = arith.constant 0 : index
    %44 = vector.load %arg8[%c1, %c0_22] : memref<8x8xf32, #tpu.memory_space<vmem>>, vector<1x8xf32>
    tpu.vector_store %arg8[%c1, %c0_22], %42 {strides = array<i32>} : memref<8x8xf32, #tpu.memory_space<vmem>>, vector<1x8xf32>,
    %cst_23 = arith.constant 0.000000e+00 : f32
    %45 = vector.broadcast %cst_23 : f32 to vector<6x8xf32>
    %c2 = arith.constant 2 : index
    %c0_24 = arith.constant 0 : index
    %46 = vector.load %arg8[%c2, %c0_24] : memref<8x8xf32, #tpu.memory_space<vmem>>, vector<6x8xf32>
    tpu.vector_store %arg8[%c2, %c0_24], %45 {strides = array<i32>} : memref<8x8xf32, #tpu.memory_space<vmem>>, vector<6x8xf32>,
    %c8_i32 = arith.constant 8 : i32
    %47 = arith.muli %arg1, %c8_i32 : i32
    %48 = tpu.iota {dimensions = array<i32: 1>} : vector<8x8xi32>
    %49 = vector.broadcast %47 : i32 to vector<8x8xi32>
    %50 = arith.addi %49, %48 : vector<8x8xi32>
    %c0_25 = arith.constant 0 : index
    %c0_26 = arith.constant 0 : index
    %51 = vector.load %arg2[%c0_25, %c0_26] : memref<8x1xi32, #tpu.memory_space<vmem>>, vector<8x1xi32>
    %52 = vector.broadcast %51 : vector<8x1xi32> to vector<8x8xi32>
    %53 = arith.cmpi eq, %52, %50 : vector<8x8xi32>
    %54 = arith.extui %53 : vector<8x8xi1> to vector<8x8xi32>
    %55 = arith.sitofp %54 : vector<8x8xi32> to vector<8x8xf32>
    %56 = arith.mulf %55, %19 : vector<8x8xf32>
    %cst_27 = arith.constant dense<0.000000e+00> : vector<8xf32>
    %57 = vector.multi_reduction <add>, %56, %cst_27 [1] : vector<8x8xf32> to vector<8xf32>
    %58 = vector.shape_cast %57 : vector<8xf32> to vector<8x1xf32>
    %cst_28 = arith.constant 7.000000e-02 : f32
    %59 = vector.broadcast %cst_28 : f32 to vector<8x1xf32>
    %60 = arith.mulf %58, %59 : vector<8x1xf32>
    %cst_29 = arith.constant dense<0.000000e+00> : vector<8x1xf32>
    %61 = tpu.matmul %55, %12, %cst_29 {dimension_numbers = #tpu.dot_dimension_numbers<[1], [0], [0], [1], [0, 0, 1, 1], [], []>} : vector<8x8xf32>, vector<8x1xf32>, vector<8x1xf32> -> vector<8x1xf32>
    %cst_30 = arith.constant 6.99999987E-8 : f32
    %62 = vector.broadcast %cst_30 : f32 to vector<8x1xf32>
    %63 = arith.mulf %61, %62 : vector<8x1xf32>
    %c0_31 = arith.constant 0 : index
    %c0_32 = arith.constant 0 : index
    %64 = vector.load %arg12[%c0_31, %c0_32] : memref<8x1xf32, #tpu.memory_space<vmem>>, vector<8x1xf32>
    %65 = arith.addf %64, %60 : vector<8x1xf32>
    %66 = arith.addf %65, %63 : vector<8x1xf32>
    %c0_33 = arith.constant 0 : index
    %c0_34 = arith.constant 0 : index
    %67 = vector.load %arg12[%c0_33, %c0_34] : memref<8x1xf32, #tpu.memory_space<vmem>>, vector<8x1xf32>
    tpu.vector_store %arg12[%c0_33, %c0_34], %66 {strides = array<i32>} : memref<8x1xf32, #tpu.memory_space<vmem>>, vector<8x1xf32>,
    %68 = arith.cmpi eq, %arg1, %arg0 : i32
    %69 = arith.extui %68 : i1 to i32
    %c0_i32_35 = arith.constant 0 : i32
    %70 = arith.cmpi ne, %69, %c0_i32_35 : i32
    scf.if %70 {
      %74 = arith.mulf %16, %10 : vector<8x128xf32>
      %cst_38 = arith.constant dense<0.000000e+00> : vector<8xf32>
      %75 = vector.multi_reduction <add>, %74, %cst_38 [1] : vector<8x128xf32> to vector<8xf32>
      %76 = vector.shape_cast %75 : vector<8xf32> to vector<8x1xf32>
      %c0_39 = arith.constant 0 : index
      %c0_40 = arith.constant 0 : index
      %77 = vector.load %arg13[%c0_39, %c0_40] : memref<8x1xf32, #tpu.memory_space<vmem>>, vector<8x1xf32>
      tpu.vector_store %arg13[%c0_39, %c0_40], %76 {strides = array<i32>} : memref<8x1xf32, #tpu.memory_space<vmem>>, vector<8x1xf32>,
      %cst_41 = arith.constant 7.000000e-02 : f32
      %78 = vector.broadcast %cst_41 : f32 to vector<8x1xf32>
      %79 = arith.mulf %76, %78 : vector<8x1xf32>
      %cst_42 = arith.constant 6.99999987E-8 : f32
      %80 = vector.broadcast %cst_42 : f32 to vector<8x1xf32>
      %81 = arith.mulf %80, %12 : vector<8x1xf32>
      %82 = arith.addf %79, %81 : vector<8x1xf32>
      %c0_43 = arith.constant 0 : index
      %c0_44 = arith.constant 0 : index
      %83 = vector.load %arg14[%c0_43, %c0_44] : memref<8x1xf32, #tpu.memory_space<vmem>>, vector<8x1xf32>
      tpu.vector_store %arg14[%c0_43, %c0_44], %82 {strides = array<i32>} : memref<8x1xf32, #tpu.memory_space<vmem>>, vector<8x1xf32>,
    } else {
    }
    %c0_i32_36 = arith.constant 0 : i32
    %71 = arith.cmpi eq, %arg1, %c0_i32_36 : i32
    %72 = arith.extui %71 : i1 to i32
    %c0_i32_37 = arith.constant 0 : i32
    %73 = arith.cmpi ne, %72, %c0_i32_37 : i32
    scf.if %73 {
      %c0_38 = arith.constant 0 : index
      %c0_39 = arith.constant 0 : index
      %74 = vector.load %arg10[%c0_38, %c0_39] : memref<8x1xf32, #tpu.memory_space<vmem>>, vector<8x1xf32>
      %c0_40 = arith.constant 0 : index
      %c0_41 = arith.constant 0 : index
      %75 = vector.load %arg11[%c0_40, %c0_41] : memref<8x1xf32, #tpu.memory_space<vmem>>, vector<8x1xf32>
      %76 = math.log %75 : vector<8x1xf32>
      %77 = arith.addf %74, %76 : vector<8x1xf32>
      %c0_42 = arith.constant 0 : index
      %c0_43 = arith.constant 0 : index
      %78 = vector.load %arg6[%c0_42, %c0_43] : memref<8x1xf32, #tpu.memory_space<vmem>>, vector<8x1xf32>
      tpu.vector_store %arg6[%c0_42, %c0_43], %77 {strides = array<i32>} : memref<8x1xf32, #tpu.memory_space<vmem>>, vector<8x1xf32>,
      %c0_44 = arith.constant 0 : index
      %c0_45 = arith.constant 0 : index
      %79 = vector.load %arg13[%c0_44, %c0_45] : memref<8x1xf32, #tpu.memory_space<vmem>>, vector<8x1xf32>
      %c0_46 = arith.constant 0 : index
      %c0_47 = arith.constant 0 : index
      %80 = vector.load %arg5[%c0_46, %c0_47] : memref<8x1xf32, #tpu.memory_space<vmem>>, vector<8x1xf32>
      tpu.vector_store %arg5[%c0_46, %c0_47], %79 {strides = array<i32>} : memref<8x1xf32, #tpu.memory_space<vmem>>, vector<8x1xf32>,
      %cst_48 = arith.constant dense<0.000000e+00> : vector<8xf32>
      %81 = vector.multi_reduction <add>, %16, %cst_48 [1] : vector<8x128xf32> to vector<8xf32>
      %82 = vector.shape_cast %81 : vector<8xf32> to vector<8x1xf32>
      %cst_49 = arith.constant 2.000000e-06 : f32
      %83 = vector.broadcast %cst_49 : f32 to vector<8x1xf32>
      %84 = arith.mulf %83, %82 : vector<8x1xf32>
      %cst_50 = arith.constant 2.000000e+00 : f32
      %85 = vector.broadcast %cst_50 : f32 to vector<8x1xf32>
      %86 = arith.addf %85, %84 : vector<8x1xf32>
      %cst_51 = arith.constant 3.200000e-11 : f32
      %87 = vector.broadcast %cst_51 : f32 to vector<8x1xf32>
      %88 = arith.addf %86, %87 : vector<8x1xf32>
      %c0_52 = arith.constant 0 : index
      %c0_53 = arith.constant 0 : index
      %89 = vector.load %arg14[%c0_52, %c0_53] : memref<8x1xf32, #tpu.memory_space<vmem>>, vector<8x1xf32>
      %cst_54 = arith.constant 2.000000e+00 : f32
      %90 = vector.broadcast %cst_54 : f32 to vector<8x1xf32>
      %91 = arith.mulf %90, %89 : vector<8x1xf32>
      %92 = arith.subf %88, %91 : vector<8x1xf32>
      %cst_55 = arith.constant 0.000000e+00 : f32
      %93 = vector.broadcast %cst_55 : f32 to vector<8x1xf32>
      %94 = arith.maximumf %92, %93 : vector<8x1xf32>
      %95 = math.sqrt %94 : vector<8x1xf32>
      %c0_56 = arith.constant 0 : index
      %c0_57 = arith.constant 0 : index
      %96 = vector.load %arg12[%c0_56, %c0_57] : memref<8x1xf32, #tpu.memory_space<vmem>>, vector<8x1xf32>
      %cst_58 = arith.constant 2.000000e+00 : f32
      %97 = vector.broadcast %cst_58 : f32 to vector<8x1xf32>
      %98 = arith.mulf %97, %96 : vector<8x1xf32>
      %99 = arith.subf %88, %98 : vector<8x1xf32>
      %cst_59 = arith.constant 0.000000e+00 : f32
      %100 = vector.broadcast %cst_59 : f32 to vector<8x1xf32>
      %101 = arith.maximumf %99, %100 : vector<8x1xf32>
      %102 = math.sqrt %101 : vector<8x1xf32>
      %103 = arith.subf %95, %102 : vector<8x1xf32>
      %cst_60 = arith.constant 1.000000e+00 : f32
      %104 = vector.broadcast %cst_60 : f32 to vector<8x1xf32>
      %105 = arith.addf %103, %104 : vector<8x1xf32>
      %cst_61 = arith.constant 0.000000e+00 : f32
      %106 = vector.broadcast %cst_61 : f32 to vector<8x1xf32>
      %107 = arith.maximumf %105, %106 : vector<8x1xf32>
      %c0_62 = arith.constant 0 : index
      %c0_63 = arith.constant 0 : index
      %108 = vector.load %arg7[%c0_62, %c0_63] : memref<8x1xf32, #tpu.memory_space<vmem>>, vector<8x1xf32>
      tpu.vector_store %arg7[%c0_62, %c0_63], %107 {strides = array<i32>} : memref<8x1xf32, #tpu.memory_space<vmem>>, vector<8x1xf32>,
    } else {
    }
    return
  }
  func.func @transform_0(%arg0: i32, %arg1: i32) -> (i32, i32) {
    %c0_i32 = arith.constant 0 : i32
    %c0_i32_0 = arith.constant 0 : i32
    return %arg0, %c0_i32 : i32, i32
  }
  func.func @transform_1(%arg0: i32, %arg1: i32) -> (i32, i32) {
    %c0_i32 = arith.constant 0 : i32
    %c0_i32_0 = arith.constant 0 : i32
    return %arg0, %c0_i32 : i32, i32
  }
  func.func @transform_2(%arg0: i32, %arg1: i32) -> (i32, i32) {
    %c0_i32 = arith.constant 0 : i32
    %c0_i32_0 = arith.constant 0 : i32
    return %arg1, %c0_i32 : i32, i32
  }
  func.func @transform_3(%arg0: i32, %arg1: i32) -> (i32, i32) {
    %c0_i32 = arith.constant 0 : i32
    %c0_i32_0 = arith.constant 0 : i32
    return %arg0, %c0_i32 : i32, i32
  }
  func.func @transform_4(%arg0: i32, %arg1: i32) -> (i32, i32) {
    %c0_i32 = arith.constant 0 : i32
    %c0_i32_0 = arith.constant 0 : i32
    return %arg0, %c0_i32 : i32, i32
  }
  func.func @transform_5(%arg0: i32, %arg1: i32) -> (i32, i32) {
    %c0_i32 = arith.constant 0 : i32
    %c0_i32_0 = arith.constant 0 : i32
    return %arg0, %c0_i32 : i32, i32
  }
  func.func @transform_6(%arg0: i32, %arg1: i32) -> (i32, i32) {
    %c0_i32 = arith.constant 0 : i32
    return %arg0, %arg1 : i32, i32
  }
}

</mosaic_0001>

<bundles_post_ra>
// kernel: tpu_custom_call.1
= control target key start
LH: loop header
LB: loop body
LE: loop exit
PB: predicated region body
PF: predicated region fallthrough
CT: control target
= control target key end

     0   :  { %s491_s0 = inlined_call_operand.vmem [shape: s32[8,1], index: 0, kind: input, shape index: {}]   ;;  %s492_s1 = inlined_call_operand.vmem [shape: f32[8,128], index: 1, kind: input, shape index: {}]   ;;  %s493_s2 = inlined_call_operand.vmem [shape: f32[8,128], index: 2, kind: input, shape index: {}]   ;;  %s494_s3 = inlined_call_operand.vmem [shape: f32[8,1], index: 3, kind: output, shape index: {0}]   ;;  %s495_s4 = inlined_call_operand.vmem [shape: f32[8,1], index: 4, kind: output, shape index: {1}]   ;;  %s496_s5 = inlined_call_operand.vmem [shape: f32[8,1], index: 5, kind: output, shape index: {2}]   ;;  %s497_s6 = inlined_call_operand.hbm [shape: f32[8,8], index: 6, kind: output, shape index: {3}]  }
   0x1   :  { %v20_v0 = vld [vmem:[%s493_s2] sm:$0xff] }
   0x2   :  { %v34_v1 = vld [vmem:[%s492_s1] sm:$0xff] }
   0x3   :  { %12 = vsyncpa [#allocation9], 0  ;;  %v21_v2 = vmul.f32 %v20_v0, %v20_v0  ;;  %v35_v3 = vmul.f32 %v34_v1, %v34_v1  ;;  %vm42_vm0 = vcmask 7168   ;;  %v375_v4 = vmov 0.0   ;;  %v141_v17 = vld [vmem:[%s491_s0] sm:$0xff]  ;;  %s379_s26 = smov [#allocation8]  }
   0x4   :  { %45 = vst.msk [vmem:[#allocation5] sm:$0xff] %vm42_vm0, %v375_v4  ;;  %317 = vmatprep.subr.bf16.mxu0 %v375_v4  ;;  %44 = vst.msk [vmem:[#allocation4] sm:$0xff] %vm42_vm0, %v375_v4  ;;  %323 = vmatprep.subr.mxu1 %v375_v4  ;;  %vm376_vm1 = vmmov 0   ;;  %v377_v5 = vmov 0   ;;  %v378_v18 = vmov -inf   ;;  %v137_v19 = vlaneseq  ;;  %s297_s27 = sshll.u32 %s379_s26, 4  ;;  %s298_s27 = int_to_ptr.vmem [resolvable:$true] %s297_s27 }
   0x5   :  { %22 = vadd.xlane.f32.xlu0 %v21_v2  ;;  %319 = vmatprep.mubr.msk.bf16.mxu0 %vm376_vm1, %v375_v4  ;;  %43 = vst.msk [vmem:[#allocation3] sm:$0xff] %vm42_vm0, %v378_v18  ;;  %vm90_vm2 = vcmask 64512   ;;  %vm131_vm4 = vcmask 57344   ;;  %vm134_vm5 = vcmask 62464   ;;  %s351_s28 = scalar_lea.vmem %s298_s27, 128  ;;  %p356_p1 = scmp.lt.s32.totalorder %s298_s27, %s298_s27 }
   0x6   :  { %325 = vmatprep.mubr.msk.f32.mxu1 %vm376_vm1, %v375_v4  ;;  %333 = vset.pattern.permute.xlu1 %v377_v5  ;;  %v138_v21 = vand.u32 127, %v137_v19  ;;  %135 = vst.msk [vmem:[#allocation8 + $0x2] sm:$0x3f] %vm134_vm5, %v375_v4  ;;  %p352_p0 = scmp.ne.s32.totalorder %s298_s27, %s351_s28  ;;  %p357_p2 = scmp.lt.s32.totalorder %s351_s28, %s351_s28 }
   0x7   :  { %334 = vset.pattern.permute.xlu0 %v377_v5 }
   0x8   :  { %p358_p3 = por %p357_p2, %p356_p1 }
   0x9   :  { %36 = vadd.xlane.f32.xlu0 %v35_v3 }
   0xa   :  { %p359_p4 = pnand %p358_p3, %p352_p0 }
   0xb   :  { %v227_v52 = vld [vmem:[#allocation5] sm:$0xff] }
   0xc   :  { %v446_v49 = vld [vmem:[#allocation3] sm:$0xff] }
  0x92   :  { %v23_v6 = vpop.xlane.xlu0 %22 }
  0x93   :  { %v24_v7 = vmax.f32 %v23_v6, 1e-24 }
  0x95   :  { %335 = vrsqrt.f32 %v24_v7 }
  0x96   :  { %v37_v8 = vpop.xlane.xlu0 %36 }
  0x97   :  { %v38_v9 = vmax.f32 %v37_v8, 1e-24 }
  0x99   :  { %337 = vrsqrt.f32 %v38_v9 }
  0x9f   :  { %v336_v10 = vpop.eup %335 }
  0xa0   :  { %v26_v11 = vmul.f32 14.285714, %v336_v10 }
  0xa2   :  { %v429_v12 = vmul.f32 %v26_v11, %v20_v0 }
  0xa3   :  { %v338_v13 = vpop.eup %337 }
  0xa4   :  { %28 = vadd.xlane.f32.xlu1 %v429_v12  ;;  %v48_v14 = vpack.c.bf16 %v429_v12, %v429_v12  ;;  %v40_v15 = vmul.f32 %v338_v13, %v34_v1 }
  0xa6   :  { %318 = vmatpush3.bf16.xpose.msra.mxu0 %v48_v14  ;;  %v47_v16 = vpack.c.bf16 %v40_v15, %v40_v15  ;;  %v235_v59 = vmul.f32 %v40_v15, %v429_v12 }
  0xad   :  { %320 = vmatmul.mubr.bf16.vlgmr.msra.gmra.mrb[0].mxu0 %v47_v16 }
  0xb5   :  { %143 = vperm.xlu1 %333, %v141_v17  }
 0x131   :  { %v438_v20 = vpop.xlane.xlu1 %28 }
 0x132   :  { %324 = vmatpush3.msra.mxu1 %v438_v20  ;;  %v240_v7 = vmul.f32 7e-08, %v438_v20 }
 0x135   :  { %v144_v22 = vpop.permute.xlu1 %143 }
 0x136   :  { %vm145_vm3 = vcmp.eq.s32.totalorder %v144_v22, %v138_v21 }
 0x137   :  { %v311_v23 = vsel %vm145_vm3, 1.0, %v375_v4 }
 0x138   :  { %326 = vmatmul.mubr.msk.f32.vlgmr.msra.gmra.mrb[0].mxu1 %vm90_vm2, %v311_v23 }
 0x180   :  { %v83_v24 = vpop.f32.mrb[0].mxu0 }
 0x181   :  { %v321_v25 = vpop.f32.mrb[1].mxu0  ;;  %v91_v26 = vsel %vm90_vm2, %v83_v24, -inf  ;;  %v148_v27 = vmul.f32 %v311_v23, %v83_v24 }
 0x182   :  { %92 = vmax.xlane.f32.xlu0 %v91_v26  ;;  %v115_v28 = vrot.slane %v91_v26, 4  ;;  %v86_v29 = vpop.f32.mrb[2].mxu0 }
 0x183   :  { %v322_v30 = vpop.f32.mrb[3].mxu0  ;;  %v149_v31 = vsel %vm90_vm2, %v148_v27, 0.0 }
 0x184   :  { %v116_v32 = vmax.f32 %v91_v26, %v115_v28  ;;  %150 = vadd.xlane.f32.xlu1 %v149_v31 }
 0x186   :  { %v117_v33 = vrot.slane %v116_v32, 2 }
 0x188   :  { %v118_v34 = vmax.f32 %v116_v32, %v117_v33  ;;  %254 = vadd.xlane.f32.xlu1 %v40_v15 }
 0x18a   :  { %v119_v35 = vrot.slane %v118_v34, 1 }
 0x18c   :  { %v120_v36 = vmax.f32 %v118_v34, %v119_v35 }
 0x18e   :  { %v121_v37 = vsub.f32 %v83_v24, %v120_v36  ;;  %132 = vst.msk [vmem:[#allocation8] sm:$0x1] %vm131_vm4, %v120_v36 }
 0x190   :  { %v122_v38 = vmul.f32 1.442695, %v121_v37 }
 0x192   :  { %339 = vpow2.f32 %v122_v38 }
 0x19c   :  { %v340_v39 = vpop.eup %339 }
 0x19d   :  { %v124_v40 = vsel %vm90_vm2, %v340_v39, 0.0 }
 0x19e   :  { %v125_v41 = vrot.slane %v124_v40, 4 }
 0x1a0   :  { %v126_v42 = vadd.f32 %v125_v41, %v124_v40 }
 0x1a2   :  { %v127_v43 = vrot.slane %v126_v42, 2 }
 0x1a4   :  { %v128_v44 = vadd.f32 %v127_v43, %v126_v42 }
 0x1a6   :  { %v129_v45 = vrot.slane %v128_v44, 1 }
 0x1a8   :  { %v130_v46 = vadd.f32 %v129_v45, %v128_v44 }
 0x1aa   :  { %133 = vst.msk [vmem:[#allocation8 + $0x1] sm:$0x1] %vm131_vm4, %v130_v46 }
 0x20b   :  { %v222_v47 = vpop.f32.mrb[0].mxu1 }
 0x20c   :  { %v327_v48 = vpop.f32.mrb[1].mxu1  ;;  %v226_v56 = vmul.f32 7e-08, %v222_v47 }
 0x20f   :  { %v93_v50 = vpop.xlane.xlu0 %92 }
 0x210   :  { %v449_v51 = vmax.f32 %v446_v49, %v93_v50 }
 0x211   :  { %v151_v53 = vpop.xlane.xlu1 %150 }
 0x212   :  { %v96_v54 = vsub.f32 %v446_v49, %v449_v51  ;;  %114 = vst.msk [vmem:[#allocation3] sm:$0xff] %vm42_vm0, %v449_v51  ;;  %v152_v55 = vmul.f32 0.07, %v151_v53  ;;  %102 = vperm.xlu0 %334, %v449_v51  }
 0x214   :  { %v228_v57 = vadd.f32 %v227_v52, %v152_v55 }
 0x215   :  { %v255_v1 = vpop.xlane.xlu1 %254 }
 0x216   :  { %v229_v58 = vadd.f32 %v228_v57, %v226_v56  ;;  %v256_v2 = vmul.f32 2e-06, %v255_v1 }
 0x218   :  { %230 = vst.msk [vmem:[#allocation5] sm:$0xff] %vm42_vm0, %v229_v58  ;;  %v257_v5 = vadd.f32 2.0, %v256_v2 }
 0x21a   :  { %v258_v10 = vadd.f32 3.2e-11, %v257_v5 }
 0x21f   :  { %v270_v3 = vld [vmem:[#allocation5] sm:$0xff] }
 0x220   :  { %v271_v8 = vmul.f32 2.0, %v270_v3 }
 0x222   :  { %v272_v12 = vsub.f32 %v258_v10, %v271_v8 }
 0x224   :  { %v273_v14 = vmax.f32 %v272_v12, 0.0 }
 0x231   :  { %236 = vadd.xlane.f32.xlu0 %v235_v59 }
 0x291   :  { %v103_v60 = vpop.permute.xlu0 %102 }
 0x292   :  { %v105_v61 = vsub.f32 %v83_v24, %v103_v60 }
 0x294   :  { %v106_v62 = vmul.f32 1.442695, %v105_v61 }
 0x296   :  { %341 = vpow2.f32 %v106_v62 }
 0x2a0   :  { %v342_v63 = vpop.eup %341 }
 0x2a1   :  { %v108_v0 = vsel %vm90_vm2, %v342_v63, 0.0 }
 0x2a2   :  { %109 = vadd.xlane.f32.xlu1 %v108_v0 }
 0x2be   :  { %v237_v6 = vpop.xlane.xlu0 %236 }
 0x2bf   :  { %238 = vst.msk [vmem:[#allocation6] sm:$0xff] %vm42_vm0, %v237_v6  ;;  %v239_v9 = vmul.f32 0.07, %v237_v6 }
 0x2c1   :  { %v241_v11 = vadd.f32 %v240_v7, %v239_v9 }
 0x2c3   :  { %242 = vst.msk [vmem:[#allocation7] sm:$0xff] %vm42_vm0, %v241_v11 }
 0x2c6   :  { %v252_v13 = vld [vmem:[#allocation6] sm:$0xff] }
 0x2c7   :  { %253 = vst.msk [vmem:[%s494_s3] sm:$0xff] %vm42_vm0, %v252_v13 }
 0x2c8   :  { %362 = shalt.err (!%p359_p4)
}
 0x2c9   :  { %s363_s7 = scalar_lea.hbm %s497_s6, 128 }
 0x2ca   :  { %p364_p5 = scmp.ne.s32.totalorder %s497_s6, %s363_s7  ;;  %p367_p6 = scmp.lt.u32.totalorder %s363_s7, %s497_s6 }
 0x2cc   :  { %p369_p7 = pnand %p367_p6, %p364_p5 }
 0x2ce   :  { %372 = shalt.err (!%p369_p7)
}
 0x2cf   :  { %300 = dma.vmem_to_hbm [thread:$0]  %s298_s27, 128, %s497_s6, [#allocation9]   ;;  %v259_v4 = vld [vmem:[#allocation7] sm:$0xff]  ;;  %343 = vrsqrt.f32 %v273_v14  ;;  %vm276_vm6 = vcmp.eq.f32.partialorder %v273_v14, inf  ;;  %v279_v23 = vand.u32 2147483648, %v273_v14  ;;  %vm278_vm8 = vcmp.eq.f32.partialorder %v273_v14, 0.0 }
 0x2d0   :  { %v260_v15 = vmul.f32 2.0, %v259_v4  ;;  %v97_v31 = vmul.f32 1.442695, %v96_v54  ;;  %v95_v33 = vld [vmem:[#allocation4] sm:$0xff]  ;;  %v246_v40 = vld [vmem:[#allocation3] sm:$0xff] }
 0x2d2   :  { %v261_v16 = vsub.f32 %v258_v10, %v260_v15 }
 0x2d4   :  { %v262_v17 = vmax.f32 %v261_v16, 0.0 }
 0x2d6   :  { %345 = vrsqrt.f32 %v262_v17  ;;  %vm265_vm7 = vcmp.eq.f32.partialorder %v262_v17, inf  ;;  %v268_v24 = vand.u32 2147483648, %v262_v17  ;;  %vm267_vm9 = vcmp.eq.f32.partialorder %v262_v17, 0.0 }
 0x2d7   :  { %347 = vpow2.f32 %v97_v31 }
 0x2d9   :  { %v344_v18 = vpop.eup %343 }
 0x2da   :  { %v275_v19 = vmul.f32 %v344_v18, %v273_v14 }
 0x2dc   :  { %v277_v21 = vsel %vm276_vm6, %v273_v14, %v275_v19 }
 0x2dd   :  { %v280_v26 = vsel %vm278_vm8, %v279_v23, %v277_v21 }
 0x2e0   :  { %v346_v20 = vpop.eup %345 }
 0x2e1   :  { %v264_v22 = vmul.f32 %v346_v20, %v262_v17  ;;  %v348_v32 = vpop.eup %347 }
 0x2e2   :  { %v99_v34 = vmul.f32 %v348_v32, %v95_v33 }
 0x2e3   :  { %v266_v25 = vsel %vm265_vm7, %v262_v17, %v264_v22 }
 0x2e4   :  { %v269_v27 = vsel %vm267_vm9, %v268_v24, %v266_v25 }
 0x2e5   :  { %v281_v28 = vsub.f32 %v269_v27, %v280_v26 }
 0x2e7   :  { %v282_v29 = vadd.f32 1.0, %v281_v28 }
 0x2e9   :  { %v283_v30 = vmax.f32 %v282_v29, 0.0 }
 0x2eb   :  { %284 = vst.msk [vmem:[%s496_s5] sm:$0xff] %vm42_vm0, %v283_v30 }
 0x32f   :  { %v110_v35 = vpop.xlane.xlu1 %109 }
 0x330   :  { %v111_v36 = vadd.f32 %v110_v35, %v99_v34 }
 0x332   :  { %113 = vst.msk [vmem:[#allocation4] sm:$0xff] %vm42_vm0, %v111_v36 }
 0x339   :  { %v247_v37 = vld [vmem:[#allocation4] sm:$0xff] }
 0x33a   :  { %349 = vlog2.f32 %v247_v37 }
 0x344   :  { %v350_v38 = vpop.eup %349 }
 0x345   :  { %v249_v39 = vmul.f32 0.6931472, %v350_v38 }
 0x347   :  { %v250_v41 = vadd.f32 %v249_v39, %v246_v40 }
 0x349   :  { %251 = vst.msk [vmem:[%s495_s4] sm:$0xff] %vm42_vm0, %v250_v41 }
 0x34a   :  { %373 = dma.done.wait [#allocation9], 128  }
 0x34b   :  { %374 = vsyncadd [#allocation9], 4294967168 }
 0x34c   :  { %310 = vsyncpa [#allocation9], 1 }

</bundles_post_ra>
